<compile_context>
chip_gen: v6e
topology: v6e:2x2x1
jax: 0.10.0
libtpu: 0.0.40
codegen_flags: <defaults>
</compile_context>

<pallas_src>
import math

import jax
import jax.numpy as jnp
from jax import lax
from jax.experimental import pallas as pl
from jax.experimental.pallas import tpu as pltpu


def _sigmoid(z):
    # sigmoid(z) == 0.5 * (tanh(z/2) + 1): one EUP op + cheap VPU ops per element.
    return 0.5 * jnp.tanh(0.5 * z) + 0.5


def mlp_kernel(w1_ref, b1_ref, w2_ref, b2_ref, w3_ref, b3_ref, x_ref, o_ref):
    # x_ref: (TB, 8) natural layout.  All compute happens in (8, TB) layout
    # (batch on the lane axis) so the VPU/EUP run at full 128-lane width.
    x = x_ref[...]

    # Layer 1: (8,8) @ (TB,8)^T -> (8, TB).  The contraction on both minor dims
    # absorbs the x transpose (MXU "NT" matmul); no explicit transpose needed.
    z1 = lax.dot_general(w1_ref[...], x,
                         dimension_numbers=(((1,), (1,)), ((), ())),
                         preferred_element_type=jnp.float32)
    h1 = _sigmoid(z1 + b1_ref[...])          # padded rows -> sigmoid(0)=0.5 (zero-weighted later)

    # Layer 2: (8,8) @ (8,TB) -> (8,TB).  Padded weight columns are zero, so the
    # 0.5 values sitting in padded rows of h1 contribute nothing.
    z2 = jnp.dot(w2_ref[...], h1, preferred_element_type=jnp.float32)
    h2 = _sigmoid(z2 + b2_ref[...])

    # Layer 3: only row 0 carries the real (out_features == 1) output.
    z3 = jnp.dot(w3_ref[...], h2, preferred_element_type=jnp.float32)
    o_ref[...] = _sigmoid(z3[0:1, :] + b3_ref[0:1, :]).astype(o_ref.dtype)


def _round_up(n, m):
    return ((n + m - 1) // m) * m


def _pad_params(params):
    """Zero-pad weights to (8,8) and biases to (8,1) so every layer is one MXU dot."""
    w1, b1, w2, b2, w3, b3 = params

    def padw(w):
        o, i = w.shape
        return jnp.zeros((8, 8), jnp.float32).at[:o, :i].set(w.astype(jnp.float32))

    def padb(b):
        o = b.shape[0]
        return jnp.zeros((8, 1), jnp.float32).at[:o, 0].set(b.astype(jnp.float32))

    return padw(w1), padb(b1), padw(w2), padb(b2), padw(w3), padb(b3)


def mlp_forward(x, params, *, tb=8192):
    """x: [batch, 8] f32 (PyTorch layout). Returns [batch, 1]."""
    batch, in_features = x.shape
    assert in_features == 8
    w1p, b1p, w2p, b2p, w3p, b3p = _pad_params(params)

    # Batch tile: big lane-dense slabs, but capped so the grid has >= 2 steps
    # (megacore split on v7x) when the batch is large enough.  Multiple of 128.
    tb = max(128, _round_up(min(tb, pl.cdiv(batch, 2)), 128))

    if batch < tb:
        # Tiny-batch edge case only (< 128 rows): a few-KiB pad so the single
        # block is fully in-bounds.  Large batches are never copied/padded.
        x = jnp.pad(x, ((0, tb - batch), (0, 0)))
        rows = tb
    else:
        rows = batch          # ragged last block handled by Pallas boundary masking

    grid_n = pl.cdiv(rows, tb)
    padded_out = grid_n * tb

    wspec = pl.BlockSpec((8, 8), lambda i: (0, 0))   # resident in VMEM across grid steps
    bspec = pl.BlockSpec((8, 1), lambda i: (0, 0))

    cost = pl.CostEstimate(
        flops=int((3 * 2 * 8 * 8 + 96) * padded_out),
        transcendentals=int(17 * padded_out),
        bytes_accessed=int(36 * batch + 3 * (8 * 8 + 8) * 4),
    )

    out_t = pl.pallas_call(
        mlp_kernel,
        out_shape=jax.ShapeDtypeStruct((1, padded_out), x.dtype),
        grid=(grid_n,),
        in_specs=[wspec, bspec, wspec, bspec, wspec, bspec,
                  pl.BlockSpec((tb, 8), lambda i: (i, 0))],   # x in natural layout, dense DMA
        out_specs=pl.BlockSpec((1, tb), lambda i: (0, i)),    # lane-dense output slab
        compiler_params=pltpu.CompilerParams(
            dimension_semantics=("parallel",),                # batch grid shards across TCs (v7x)
        ),
        cost_estimate=cost,
    )(w1p, b1p, w2p, b2p, w3p, b3p, x)

    return out_t[0, :batch][:, None]                          # back to [batch, 1]


def init_params(key):
    # Mimic PyTorch nn.Linear default init: U(-1/sqrt(fan_in), 1/sqrt(fan_in)).
    # Weights kept in PyTorch layout [out, in], biases [out].
    def linear(key, fan_in, fan_out):
        kw, kb = jax.random.split(key)
        bound = 1.0 / math.sqrt(fan_in)
        w = jax.random.uniform(kw, (fan_out, fan_in), jnp.float32, -bound, bound)
        b = jax.random.uniform(kb, (fan_out,), jnp.float32, -bound, bound)
        return w, b

    k1, k2, k3 = jax.random.split(key, 3)
    w1, b1 = linear(k1, 8, 6)
    w2, b2 = linear(k2, 6, 4)
    w3, b3 = linear(k3, 4, 1)
    return (w1, b1, w2, b2, w3, b3)


def reference_forward(x, params):
    w1, b1, w2, b2, w3, b3 = params
    h = jax.nn.sigmoid(x @ w1.T + b1)
    h = jax.nn.sigmoid(h @ w2.T + b2)
    h = jax.nn.sigmoid(h @ w3.T + b3)
    return h


if __name__ == "__main__":
    key = jax.random.PRNGKey(0)
    kp, kx1, kx2, kx3 = jax.random.split(key, 4)
    params = init_params(kp)

    # Small shape consistent with the module (Linear(8, ...)): batch=8.
    batch = 8
    x = jax.random.normal(kx1, (batch, 8), jnp.float32)
    out = jax.block_until_ready(mlp_forward(x, params))
    ref = reference_forward(x, params)
    assert out.shape == (batch, 1), out.shape
    assert jnp.allclose(out, ref, atol=1e-5, rtol=1e-5), "mismatch vs reference (batch=8)"

    # Multi-step pipelined grid with a ragged last block (384 rows, tb=256 -> 2 steps).
    batch2 = 384
    x2 = jax.random.normal(kx2, (batch2, 8), jnp.float32)
    out2 = jax.block_until_ready(mlp_forward(x2, params))
    ref2 = reference_forward(x2, params)
    assert out2.shape == (batch2, 1), out2.shape
    assert jnp.allclose(out2, ref2, atol=1e-5, rtol=1e-5), "mismatch vs reference (batch=384)"

    # Larger ragged batch (1000 rows, tb=512 -> 2 steps, second block partial).
    batch3 = 1000
    x3 = jax.random.normal(kx3, (batch3, 8), jnp.float32)
    out3 = jax.block_until_ready(mlp_forward(x3, params))
    ref3 = reference_forward(x3, params)
    assert out3.shape == (batch3, 1), out3.shape
    assert jnp.allclose(out3, ref3, atol=1e-5, rtol=1e-5), "mismatch vs reference (batch=1000)"

    print("KERNEL_OK")
</pallas_src>

<mosaic_0001>
module attributes {stable_mosaic.version = 11 : i64} {
  func.func @mlp_kernel(%arg0: i32, %arg1: memref<8x8xf32, #tpu.memory_space<vmem>>, %arg2: memref<8x1xf32, #tpu.memory_space<vmem>>, %arg3: memref<8x8xf32, #tpu.memory_space<vmem>>, %arg4: memref<8x1xf32, #tpu.memory_space<vmem>>, %arg5: memref<8x8xf32, #tpu.memory_space<vmem>>, %arg6: memref<8x1xf32, #tpu.memory_space<vmem>>, %arg7: memref<128x8xf32, #tpu.memory_space<vmem>>, %arg8: memref<1x128xf32, #tpu.memory_space<vmem>>) attributes {dimension_semantics = [#tpu.dimension_semantics<parallel>], iteration_bounds = array<i64: 1>, scalar_prefetch = 0 : i64, scratch_operands = 0 : i64, tpu.core_type = #tpu.core_type<tc>, window_params = [{pipeline_mode = #tpu.pipeline_mode<synchronous>, transform_indices = @transform_0, window_bounds = array<i64: 8, 8>}, {pipeline_mode = #tpu.pipeline_mode<synchronous>, transform_indices = @transform_1, window_bounds = array<i64: 8, 1>}, {pipeline_mode = #tpu.pipeline_mode<synchronous>, transform_indices = @transform_2, window_bounds = array<i64: 8, 8>}, {pipeline_mode = #tpu.pipeline_mode<synchronous>, transform_indices = @transform_3, window_bounds = array<i64: 8, 1>}, {pipeline_mode = #tpu.pipeline_mode<synchronous>, transform_indices = @transform_4, window_bounds = array<i64: 8, 8>}, {pipeline_mode = #tpu.pipeline_mode<synchronous>, transform_indices = @transform_5, window_bounds = array<i64: 8, 1>}, {transform_indices = @transform_6, window_bounds = array<i64: 128, 8>}, {transform_indices = @transform_7, window_bounds = array<i64: 1, 128>}]} {
    %c0 = arith.constant 0 : index
    %c0_0 = arith.constant 0 : index
    %0 = vector.load %arg7[%c0, %c0_0] : memref<128x8xf32, #tpu.memory_space<vmem>>, vector<128x8xf32>
    %c0_1 = arith.constant 0 : index
    %c0_2 = arith.constant 0 : index
    %1 = vector.load %arg1[%c0_1, %c0_2] : memref<8x8xf32, #tpu.memory_space<vmem>>, vector<8x8xf32>
    %cst = arith.constant dense<0.000000e+00> : vector<8x128xf32>
    %2 = tpu.matmul %1, %0, %cst {dimension_numbers = #tpu.dot_dimension_numbers<[1], [1], [0], [0], [0, 0, 1, 0], [], []>} : vector<8x8xf32>, vector<128x8xf32>, vector<8x128xf32> -> vector<8x128xf32>
    %c0_3 = arith.constant 0 : index
    %c0_4 = arith.constant 0 : index
    %3 = vector.load %arg2[%c0_3, %c0_4] : memref<8x1xf32, #tpu.memory_space<vmem>>, vector<8x1xf32>
    %4 = vector.broadcast %3 : vector<8x1xf32> to vector<8x128xf32>
    %5 = arith.addf %2, %4 : vector<8x128xf32>
    %cst_5 = arith.constant 5.000000e-01 : f32
    %6 = vector.broadcast %cst_5 : f32 to vector<8x128xf32>
    %7 = arith.mulf %6, %5 : vector<8x128xf32>
    %8 = math.tanh %7 : vector<8x128xf32>
    %cst_6 = arith.constant 5.000000e-01 : f32
    %9 = vector.broadcast %cst_6 : f32 to vector<8x128xf32>
    %10 = arith.mulf %9, %8 : vector<8x128xf32>
    %cst_7 = arith.constant 5.000000e-01 : f32
    %11 = vector.broadcast %cst_7 : f32 to vector<8x128xf32>
    %12 = arith.addf %10, %11 : vector<8x128xf32>
    %c0_8 = arith.constant 0 : index
    %c0_9 = arith.constant 0 : index
    %13 = vector.load %arg3[%c0_8, %c0_9] : memref<8x8xf32, #tpu.memory_space<vmem>>, vector<8x8xf32>
    %cst_10 = arith.constant dense<0.000000e+00> : vector<8x128xf32>
    %14 = tpu.matmul %13, %12, %cst_10 {dimension_numbers = #tpu.dot_dimension_numbers<[1], [0], [0], [1], [0, 0, 1, 1], [], []>} : vector<8x8xf32>, vector<8x128xf32>, vector<8x128xf32> -> vector<8x128xf32>
    %c0_11 = arith.constant 0 : index
    %c0_12 = arith.constant 0 : index
    %15 = vector.load %arg4[%c0_11, %c0_12] : memref<8x1xf32, #tpu.memory_space<vmem>>, vector<8x1xf32>
    %16 = vector.broadcast %15 : vector<8x1xf32> to vector<8x128xf32>
    %17 = arith.addf %14, %16 : vector<8x128xf32>
    %cst_13 = arith.constant 5.000000e-01 : f32
    %18 = vector.broadcast %cst_13 : f32 to vector<8x128xf32>
    %19 = arith.mulf %18, %17 : vector<8x128xf32>
    %20 = math.tanh %19 : vector<8x128xf32>
    %cst_14 = arith.constant 5.000000e-01 : f32
    %21 = vector.broadcast %cst_14 : f32 to vector<8x128xf32>
    %22 = arith.mulf %21, %20 : vector<8x128xf32>
    %cst_15 = arith.constant 5.000000e-01 : f32
    %23 = vector.broadcast %cst_15 : f32 to vector<8x128xf32>
    %24 = arith.addf %22, %23 : vector<8x128xf32>
    %c0_16 = arith.constant 0 : index
    %c0_17 = arith.constant 0 : index
    %25 = vector.load %arg5[%c0_16, %c0_17] : memref<8x8xf32, #tpu.memory_space<vmem>>, vector<8x8xf32>
    %cst_18 = arith.constant dense<0.000000e+00> : vector<8x128xf32>
    %26 = tpu.matmul %25, %24, %cst_18 {dimension_numbers = #tpu.dot_dimension_numbers<[1], [0], [0], [1], [0, 0, 1, 1], [], []>} : vector<8x8xf32>, vector<8x128xf32>, vector<8x128xf32> -> vector<8x128xf32>
    %27 = vector.extract_strided_slice %26 {offsets = [0, 0], sizes = [1, 128], strides = [1, 1]} : vector<8x128xf32> to vector<1x128xf32>
    %c0_19 = arith.constant 0 : index
    %c0_20 = arith.constant 0 : index
    %28 = vector.load %arg6[%c0_19, %c0_20] : memref<8x1xf32, #tpu.memory_space<vmem>>, vector<1x1xf32>
    %29 = vector.broadcast %28 : vector<1x1xf32> to vector<1x128xf32>
    %30 = arith.addf %27, %29 : vector<1x128xf32>
    %cst_21 = arith.constant 5.000000e-01 : f32
    %31 = vector.broadcast %cst_21 : f32 to vector<1x128xf32>
    %32 = arith.mulf %31, %30 : vector<1x128xf32>
    %33 = math.tanh %32 : vector<1x128xf32>
    %cst_22 = arith.constant 5.000000e-01 : f32
    %34 = vector.broadcast %cst_22 : f32 to vector<1x128xf32>
    %35 = arith.mulf %34, %33 : vector<1x128xf32>
    %cst_23 = arith.constant 5.000000e-01 : f32
    %36 = vector.broadcast %cst_23 : f32 to vector<1x128xf32>
    %37 = arith.addf %35, %36 : vector<1x128xf32>
    %c0_24 = arith.constant 0 : index
    %c0_25 = arith.constant 0 : index
    %38 = vector.load %arg8[%c0_24, %c0_25] : memref<1x128xf32, #tpu.memory_space<vmem>>, vector<1x128xf32>
    tpu.vector_store %arg8[%c0_24, %c0_25], %37 {strides = array<i32>} : memref<1x128xf32, #tpu.memory_space<vmem>>, vector<1x128xf32>,
    return
  }
  func.func @transform_0(%arg0: i32) -> (i32, i32) {
    %c0_i32 = arith.constant 0 : i32
    %c0_i32_0 = arith.constant 0 : i32
    %c0_i32_1 = arith.constant 0 : i32
    return %c0_i32, %c0_i32_0 : i32, i32
  }
  func.func @transform_1(%arg0: i32) -> (i32, i32) {
    %c0_i32 = arith.constant 0 : i32
    %c0_i32_0 = arith.constant 0 : i32
    %c0_i32_1 = arith.constant 0 : i32
    return %c0_i32, %c0_i32_0 : i32, i32
  }
  func.func @transform_2(%arg0: i32) -> (i32, i32) {
    %c0_i32 = arith.constant 0 : i32
    %c0_i32_0 = arith.constant 0 : i32
    %c0_i32_1 = arith.constant 0 : i32
    return %c0_i32, %c0_i32_0 : i32, i32
  }
  func.func @transform_3(%arg0: i32) -> (i32, i32) {
    %c0_i32 = arith.constant 0 : i32
    %c0_i32_0 = arith.constant 0 : i32
    %c0_i32_1 = arith.constant 0 : i32
    return %c0_i32, %c0_i32_0 : i32, i32
  }
  func.func @transform_4(%arg0: i32) -> (i32, i32) {
    %c0_i32 = arith.constant 0 : i32
    %c0_i32_0 = arith.constant 0 : i32
    %c0_i32_1 = arith.constant 0 : i32
    return %c0_i32, %c0_i32_0 : i32, i32
  }
  func.func @transform_5(%arg0: i32) -> (i32, i32) {
    %c0_i32 = arith.constant 0 : i32
    %c0_i32_0 = arith.constant 0 : i32
    %c0_i32_1 = arith.constant 0 : i32
    return %c0_i32, %c0_i32_0 : i32, i32
  }
  func.func @transform_6(%arg0: i32) -> (i32, i32) {
    %c0_i32 = arith.constant 0 : i32
    %c0_i32_0 = arith.constant 0 : i32
    return %arg0, %c0_i32 : i32, i32
  }
  func.func @transform_7(%arg0: i32) -> (i32, i32) {
    %c0_i32 = arith.constant 0 : i32
    %c0_i32_0 = arith.constant 0 : i32
    return %c0_i32, %arg0 : i32, i32
  }
}

</mosaic_0001>

<bundles_post_ra>
// kernel: tpu_custom_call.1
= control target key start
LH: loop header
LB: loop body
LE: loop exit
PB: predicated region body
PF: predicated region fallthrough
CT: control target
= control target key end

     0   :  { %vm50_vm0 = vcmask 64512   ;;  %v479_v1 = vmov 0.0   ;;  %vm480_vm1 = vmmov 0   ;;  %v481_v2 = vmov 0   ;;  %s635_s0 = inlined_call_operand.vmem [shape: f32[8,8], index: 0, kind: input, shape index: {}]   ;;  %s636_s1 = inlined_call_operand.vmem [shape: f32[8,1], index: 1, kind: input, shape index: {}]   ;;  %s637_s2 = inlined_call_operand.vmem [shape: f32[8,8], index: 2, kind: input, shape index: {}]   ;;  %s638_s3 = inlined_call_operand.vmem [shape: f32[8,1], index: 3, kind: input, shape index: {}]   ;;  %s639_s4 = inlined_call_operand.vmem [shape: f32[8,8], index: 4, kind: input, shape index: {}]   ;;  %s640_s5 = inlined_call_operand.vmem [shape: f32[8,1], index: 5, kind: input, shape index: {}]   ;;  %s641_s6 = inlined_call_operand.vmem [shape: f32[128,8], index: 6, kind: input, shape index: {}]   ;;  %s642_s7 = inlined_call_operand.hbm [shape: f32[1,128], index: 7, kind: output, shape index: {}]  }
   0x1   :  { %v42_v0 = vld [vmem:[%s641_s6 + $0x78] sm:$0xff]  ;;  %400 = vmatprep.subr.mxu0 %v479_v1  ;;  %432 = vmatprep.mubr.msk.f32.mxu0 %vm480_vm1, %v479_v1  ;;  %v41_v3 = vld [vmem:[%s641_s6 + $0x70] sm:$0xff]  ;;  %v44_v4 = vld [vmem:[%s636_s1] sm:$0xff] }
   0x2   :  { %401 = vmatpush3.xpose.msk.msra.mxu0 %vm50_vm0, %v42_v0  ;;  %449 = vset.pattern.permute.xlu0 %v481_v2 }
   0x3   :  { %402 = vmatprep.subr.mxu0 %v479_v1  ;;  %435 = vmatprep.subr.mxu1 %v479_v1 }
   0x4   :  { %437 = vmatprep.mubr.msk.f32.mxu1 %vm480_vm1, %v479_v1  ;;  %450 = vset.pattern.permute.xlu1 %v481_v2 }
   0x5   :  { %47 = vperm.xlu0 %449, %v44_v4  }
   0x6   :  { %403 = vmatpush3.xpose.msk.msra.mxu0 %vm50_vm0, %v41_v3 }
   0x7   :  { %12 = vsyncpa [#allocation3], 0  ;;  %404 = vmatprep.subr.mxu0 %v479_v1  ;;  %v40_v5 = vld [vmem:[%s641_s6 + $0x68] sm:$0xff]  ;;  %v177_v6 = vld [vmem:[%s638_s3] sm:$0xff] }
   0x8   :  { %v39_v7 = vld [vmem:[%s641_s6 + $0x60] sm:$0xff]  ;;  %v38_v8 = vld [vmem:[%s641_s6 + $0x58] sm:$0xff]  ;;  %v37_v9 = vld [vmem:[%s641_s6 + $0x50] sm:$0xff] }
   0x9   :  { %180 = vperm.xlu0 %449, %v177_v6   ;;  %v36_v10 = vld [vmem:[%s641_s6 + $0x48] sm:$0xff]  ;;  %v35_v11 = vld [vmem:[%s641_s6 + $0x40] sm:$0xff]  ;;  %v34_v12 = vld [vmem:[%s641_s6 + $0x38] sm:$0xff] }
   0xa   :  { %405 = vmatpush3.xpose.msk.msra.mxu0 %vm50_vm0, %v40_v5  ;;  %v33_v13 = vld [vmem:[%s641_s6 + $0x30] sm:$0xff]  ;;  %v32_v14 = vld [vmem:[%s641_s6 + $0x28] sm:$0xff]  ;;  %v31_v15 = vld [vmem:[%s641_s6 + $0x20] sm:$0xff] }
   0xb   :  { %406 = vmatprep.subr.mxu0 %v479_v1  ;;  %v30_v16 = vld [vmem:[%s641_s6 + $0x18] sm:$0xff]  ;;  %v29_v17 = vld [vmem:[%s641_s6 + $0x10] sm:$0xff]  ;;  %v28_v18 = vld [vmem:[%s641_s6 + $0x8] sm:$0xff] }
   0xc   :  { %v27_v19 = vld [vmem:[%s641_s6] sm:$0xff] }
   0xd   :  { %v43_v20 = vld [vmem:[%s635_s0] sm:$0xff] }
   0xe   :  { %407 = vmatpush3.xpose.msk.msra.mxu0 %vm50_vm0, %v39_v7  ;;  %v176_v29 = vld [vmem:[%s637_s2] sm:$0xff] }
   0xf   :  { %408 = vmatprep.subr.mxu0 %v479_v1  ;;  %v334_v30 = vld [vmem:[%s640_s5] sm:$0x1]  ;;  %s482_s5 = smov [#allocation2]  }
  0x10   :  { %337 = vperm.xlu1 %450, %v334_v30   ;;  %v260_v39 = vld [vmem:[%s639_s4] sm:$0xff]  ;;  %s352_s15 = sshll.u32 %s482_s5, 4  ;;  %s353_s15 = int_to_ptr.vmem [resolvable:$true] %s352_s15 }
  0x11   :  { %s457_s16 = scalar_lea.vmem %s353_s15, 16  ;;  %s461_s17 = scalar_lea.vmem %s353_s15, 32 }
  0x12   :  { %409 = vmatpush3.xpose.msk.msra.mxu0 %vm50_vm0, %v38_v8  ;;  %p458_p0 = scmp.ne.s32.totalorder %s353_s15, %s457_s16  ;;  %p462_p1 = scmp.lt.s32.totalorder %s353_s15, %s353_s15 }
  0x13   :  { %410 = vmatprep.subr.mxu0 %v479_v1  ;;  %p463_p2 = scmp.lt.s32.totalorder %s461_s17, %s457_s16 }
  0x15   :  { %p464_p3 = por %p463_p2, %p462_p1 }
  0x16   :  { %411 = vmatpush3.xpose.msk.msra.mxu0 %vm50_vm0, %v37_v9 }
  0x17   :  { %412 = vmatprep.subr.mxu0 %v479_v1  ;;  %p465_p4 = pnand %p464_p3, %p458_p0 }
  0x1a   :  { %413 = vmatpush3.xpose.msk.msra.mxu0 %vm50_vm0, %v36_v10 }
  0x1b   :  { %414 = vmatprep.subr.mxu0 %v479_v1 }
  0x1e   :  { %415 = vmatpush3.xpose.msk.msra.mxu0 %vm50_vm0, %v35_v11 }
  0x1f   :  { %416 = vmatprep.subr.mxu0 %v479_v1 }
  0x22   :  { %417 = vmatpush3.xpose.msk.msra.mxu0 %vm50_vm0, %v34_v12 }
  0x23   :  { %418 = vmatprep.subr.mxu0 %v479_v1 }
  0x26   :  { %419 = vmatpush3.xpose.msk.msra.mxu0 %vm50_vm0, %v33_v13 }
  0x27   :  { %420 = vmatprep.subr.mxu0 %v479_v1 }
  0x2a   :  { %421 = vmatpush3.xpose.msk.msra.mxu0 %vm50_vm0, %v32_v14 }
  0x2b   :  { %422 = vmatprep.subr.mxu0 %v479_v1 }
  0x2e   :  { %423 = vmatpush3.xpose.msk.msra.mxu0 %vm50_vm0, %v31_v15 }
  0x2f   :  { %424 = vmatprep.subr.mxu0 %v479_v1 }
  0x32   :  { %425 = vmatpush3.xpose.msk.msra.mxu0 %vm50_vm0, %v30_v16 }
  0x33   :  { %426 = vmatprep.subr.mxu0 %v479_v1 }
  0x36   :  { %427 = vmatpush3.xpose.msk.msra.mxu0 %vm50_vm0, %v29_v17 }
  0x37   :  { %428 = vmatprep.subr.mxu0 %v479_v1 }
  0x3a   :  { %429 = vmatpush3.xpose.msk.msra.mxu0 %vm50_vm0, %v28_v18 }
  0x3b   :  { %430 = vmatprep.subr.mxu0 %v479_v1 }
  0x3e   :  { %431 = vmatpush3.xpose.msk.msra.mxu0 %vm50_vm0, %v27_v19 }
  0x41   :  { %433 = vmatmul.mubr.msk.f32.vlgmr.msra.gmra.mxu0 %vm50_vm0, %v43_v20 }
  0x80   :  { %v48_v21 = vpop.permute.xlu0 %47 }
  0x84   :  { %v181_v31 = vpop.permute.xlu0 %180 }
  0x8b   :  { %v338_v40 = vpop.permute.xlu1 %337 }
 0x101   :  { %v168_v22 = vpop.f32.mrf.mxu0 }
 0x102   :  { %v169_v23 = vadd.f32 %v168_v22, %v48_v21 }
 0x103   :  { %v434_v24 = vpop.f32.mrf.mxu0 }
 0x104   :  { %v172_v25 = vmul.f32 0.5, %v169_v23 }
 0x106   :  { %451 = vtanh.f32 %v172_v25 }
 0x113   :  { %v452_v26 = vpop.eup %451 }
 0x114   :  { %v174_v27 = vmul.f32 0.5, %v452_v26 }
 0x116   :  { %v175_v28 = vadd.f32 0.5, %v174_v27 }
 0x118   :  { %436 = vmatpush3.msra.mxu1 %v175_v28 }
 0x119   :  { %438 = vmatmul.mubr.msk.f32.vlgmr.msra.gmra.mxu1 %vm50_vm0, %v176_v29  ;;  %440 = vmatprep.subr.mxu1 %v479_v1 }
 0x11a   :  { %442 = vmatprep.mubr.msk.f32.mxu1 %vm480_vm1, %v479_v1 }
 0x1d9   :  { %v252_v32 = vpop.f32.mrf.mxu1 }
 0x1da   :  { %v253_v33 = vadd.f32 %v252_v32, %v181_v31 }
 0x1db   :  { %v439_v34 = vpop.f32.mrf.mxu1 }
 0x1dc   :  { %v256_v35 = vmul.f32 0.5, %v253_v33 }
 0x1de   :  { %453 = vtanh.f32 %v256_v35 }
 0x1eb   :  { %v454_v36 = vpop.eup %453 }
 0x1ec   :  { %v258_v37 = vmul.f32 0.5, %v454_v36 }
 0x1ee   :  { %v259_v38 = vadd.f32 0.5, %v258_v37 }
 0x1f0   :  { %441 = vmatpush3.msra.mxu1 %v259_v38 }
 0x1f1   :  { %443 = vmatmul.mubr.msk.f32.vlgmr.msra.gmra.mxu1 %vm50_vm0, %v260_v39 }
 0x2b1   :  { %v330_v41 = vpop.f32.mrf.mxu1 }
 0x2b2   :  { %v340_v42 = vadd.f32 %v338_v40, %v330_v41 }
 0x2b3   :  { %v444_v43 = vpop.f32.mrf.mxu1 }
 0x2b4   :  { %v341_v44 = vmul.f32 0.5, %v340_v42 }
 0x2b6   :  { %455 = vtanh.f32 %v341_v44 }
 0x2c3   :  { %v456_v45 = vpop.eup %455 }
 0x2c4   :  { %v343_v46 = vmul.f32 0.5, %v456_v45 }
 0x2c6   :  { %v344_v47 = vadd.f32 0.5, %v343_v46 }
 0x2c8   :  { %345 = vst [vmem:[#allocation2] sm:$0x1] %v344_v47 }
 0x2c9   :  { %468 = shalt.err (!%p465_p4)
}
 0x2ca   :  { %355 = dma.vmem_to_hbm [thread:$0]  %s353_s15, 16, %s642_s7, [#allocation3]  }
 0x2cb   :  { %477 = dma.done.wait [#allocation3], 16  }
 0x2cc   :  { %478 = vsyncadd [#allocation3], 4294967280 }
 0x2cd   :  { %359 = vsyncpa [#allocation3], 1 }

</bundles_post_ra>
